<compile_context>
chip_gen: v7x
topology: tpu7x:2x2x1
jax: 0.10.0
libtpu: 0.0.40
codegen_flags: <defaults>
</compile_context>

<pallas_src>
import functools

import jax
import jax.numpy as jnp
from jax.experimental import pallas as pl
from jax.experimental.pallas import tpu as pltpu

# scaled-down stand-ins for the real sizes (256 -> 16, 512 -> 32, etc.)
IMG = 16        # plays the role of 256 (face_pool target resolution)
SRC = 32        # raw input resolution (plays the role of 1024)
LAT = 32        # plays the role of 512 (W-space dim)
NS = 4          # plays the role of decoder.n_latent (n_styles)
IN_NC = 3       # RGB; encoder input is cat(input, output) -> 2*IN_NC channels
N_Z = 64        # plays the role of the 100000 samples used for latent_avg

NL = NS * LAT                  # 128  (lane-dense latent width)
CIN = IN_NC * IMG * IMG        # 768  (lane-dense flattened image width)
COMPUTE_DT = jnp.bfloat16      # MXU compute dtype (accumulation stays f32)


def _round_up(x, m):
    return (x + m - 1) // m * m


def _row_tile(rows, target):
    # Tile the row (M) axis: full rows (rounded to a sublane multiple) when they
    # fit under `target`, otherwise `target`-row tiles.  At real scale pick
    # target >=128 on v5e / >=256 on v6e & v7x (pad the batch if needed).
    return min(_round_up(rows, 8), target)


# --------------------------- Pallas kernels ---------------------------------

def _pool_kernel(x_ref, m_ref, o_ref):
    # Windowed mean as one small matmul per row-group: each input row holds the
    # fh consecutive image rows of one output row; the (fh*W, out_w) matrix
    # averages each fh x fw window.  bf16 operands, f32 accumulation.
    o_ref[...] = jnp.dot(x_ref[...], m_ref[...],
                         preferred_element_type=jnp.float32)


def _matmul_bias_kernel(x_ref, w_ref, b_ref, o_ref):
    o_ref[...] = (jnp.dot(x_ref[...], w_ref[...],
                          preferred_element_type=jnp.float32)
                  + b_ref[...]).astype(o_ref.dtype)


def _style_mean_kernel(z_ref, w_ref, b_ref, o_ref, acc_ref, *, inv_n):
    # latent_avg = (z @ W_style).mean(0, keepdim=True) + b, tiled over samples.
    # Per-step work is one bf16 (tile, k)@(k, n) matmul accumulated into an f32
    # VMEM scratch; the cross-sublane reduce, 1/N scale and bias run once at
    # the last grid step.
    i = pl.program_id(0)

    @pl.when(i == 0)
    def _():
        acc_ref[...] = jnp.zeros_like(acc_ref)

    acc_ref[...] += jnp.dot(z_ref[...], w_ref[...],
                            preferred_element_type=jnp.float32)

    @pl.when(i == pl.num_programs(0) - 1)
    def _():
        o_ref[...] = (jnp.sum(acc_ref[...], axis=0, keepdims=True) * inv_n
                      + b_ref[...])


def _restyle_loop_kernel(x_in_ref, img0_ref, lat0_ref,
                         w_in_ref, w_out_ref, b_enc_ref,
                         w_dec_ref, b_dec_ref,
                         lat_ref, img_ref,
                         enc_in_ref):
    # Fused ReStyle iteration.  grid = (M_tiles, n_iter): the batch lives in
    # the MXU M dimension (TM rows per matmul), the weights use constant block
    # indices (VMEM-resident across iterations), and the latent / output image
    # recur through the output blocks revisited along the "arbitrary" axis.
    it = pl.program_id(1)

    @pl.when(it == 0)
    def _():
        lat_ref[...] = lat0_ref[...]                       # latent_avg, tiled
        img_ref[...] = jnp.broadcast_to(img0_ref[...], img_ref.shape)  # image_avg
        # Iteration-invariant encoder half, computed once per M tile.
        # TODO(synk): hoisting is only valid for this linear encoder stand-in;
        # the real nonlinear IR-SE50 encoder on cat(x, y) cannot be split.
        enc_in_ref[...] = (jnp.dot(x_in_ref[...], w_in_ref[...],
                                   preferred_element_type=jnp.float32)
                           + b_enc_ref[...])

    # TODO(synk): at real scale the 1024px decoder output must be face-pooled
    # to 256px here before re-entering the encoder; at this toy scale the
    # decoder stand-in already emits IMG-res images so the pool is identity.
    x_out = img_ref[...].astype(COMPUTE_DT)                # recurrent cast only
    resid = enc_in_ref[...] + jnp.dot(x_out, w_out_ref[...],
                                      preferred_element_type=jnp.float32)
    lat = lat_ref[...] + resid                             # f32 latent update
    lat_ref[...] = lat
    img_ref[...] = (jnp.dot(lat.astype(COMPUTE_DT), w_dec_ref[...],
                            preferred_element_type=jnp.float32)
                    + b_dec_ref[...])                      # decoder stand-in


# --------------------------- wrappers ----------------------------------------

@functools.lru_cache(maxsize=None)
def _group_pool_matrix(w, out_w, fh, fw):
    # (fh*W, out_w) windowed-mean matrix for one group of fh image rows.
    # This is the per-window form of AdaptiveAvgPool2d: out_h^2 times smaller
    # than the full (H*W, out_h*out_w) Kronecker matrix.
    col = jnp.arange(w) // fw
    m1 = (col[:, None] == jnp.arange(out_w)[None, :]).astype(jnp.float32)
    m = jnp.tile(m1, (fh, 1)) * (1.0 / (fh * fw))
    return m.astype(COMPUTE_DT)


def adaptive_avg_pool(img, out_h, out_w, row_tile=512):
    """torch.nn.AdaptiveAvgPool2d((out_h, out_w)) for divisible sizes (the
    1024->256 / 256->256 cases the model hits), tiled over the row-group axis
    so real-scale inputs never exceed scoped VMEM."""
    B, C, H, W = img.shape
    if H == out_h and W == out_w:
        return img
    # TODO(synk): torch's floor/ceil bins for non-divisible sizes are not implemented.
    assert H % out_h == 0 and W % out_w == 0
    fh, fw = H // out_h, W // out_w
    rows = B * C * out_h
    x = img.reshape(rows, fh * W).astype(COMPUTE_DT)       # contiguous row-group view
    m = _group_pool_matrix(W, out_w, fh, fw)
    tr = _row_tile(rows, row_tile)
    rows_p = _round_up(rows, tr)
    if rows_p != rows:
        x = jnp.pad(x, ((0, rows_p - rows), (0, 0)))
    pooled = pl.pallas_call(
        _pool_kernel,
        grid=(rows_p // tr,),
        in_specs=[pl.BlockSpec((tr, fh * W), lambda i: (i, 0)),
                  pl.BlockSpec((fh * W, out_w), lambda i: (0, 0))],
        out_specs=pl.BlockSpec((tr, out_w), lambda i: (i, 0)),
        out_shape=jax.ShapeDtypeStruct((rows_p, out_w), jnp.float32),
        compiler_params=pltpu.CompilerParams(dimension_semantics=("parallel",)),
    )(x, m)
    return pooled[:rows].reshape(B, C, out_h, out_w)


def matmul_bias(x, w, b):
    # One-time init matmul for image_avg (M=1); whole-array blocks are fine
    # here, tile the M/N axes if reused at real scale.
    M, N = x.shape[0], w.shape[1]
    return pl.pallas_call(
        _matmul_bias_kernel,
        out_shape=jax.ShapeDtypeStruct((M, N), jnp.float32),
    )(x, w, b.reshape(1, N))


def latent_avg_from_samples(z, w, b, tile=2048):
    # latent_avg over the (100k-sample stand-in) z: large bf16 sample tiles,
    # f32 accumulator scratch, single deferred reduce + bias at the end.
    nz, k = z.shape
    n = w.shape[1]
    tile = min(tile, _round_up(nz, 8))
    nz_p = _round_up(nz, tile)
    if nz_p != nz:
        z = jnp.pad(z, ((0, nz_p - nz), (0, 0)))           # zero rows add 0 to the sum
    return pl.pallas_call(
        functools.partial(_style_mean_kernel, inv_n=1.0 / nz),
        grid=(nz_p // tile,),
        in_specs=[pl.BlockSpec((tile, k), lambda i: (i, 0)),
                  pl.BlockSpec((k, n), lambda i: (0, 0)),
                  pl.BlockSpec((1, n), lambda i: (0, 0))],
        out_specs=pl.BlockSpec((1, n), lambda i: (0, 0)),
        out_shape=jax.ShapeDtypeStruct((1, n), jnp.float32),
        scratch_shapes=[pltpu.VMEM((tile, n), jnp.float32)],
        compiler_params=pltpu.CompilerParams(dimension_semantics=("arbitrary",)),
    )(z.astype(COMPUTE_DT), w.astype(COMPUTE_DT), b.reshape(1, n))


def restyle_loop(x_in, img0, lat0, w_in, w_out, b_enc, w_dec, b_dec, n_iter):
    """One fused pallas_call over the whole ReStyle iteration loop, with the
    batch folded into the MXU M dimension."""
    B = x_in.shape[0]
    tm = _row_tile(B, 256)                 # >=128 (v5e) / >=256 (v6e, v7x) at real scale
    b_pad = _round_up(B, tm)
    if b_pad != B:
        x_in = jnp.pad(x_in, ((0, b_pad - B), (0, 0)))
        lat0 = jnp.pad(lat0, ((0, b_pad - B), (0, 0)))
    # NOTE(v7x): the constant-index weight blocks could be single-buffered
    # (pipeline_mode=pl.Buffered(1)) to halve their VMEM footprint on the
    # 64 MiB-per-TC parts; left at the default here since the toy weights are tiny.
    lat_out, img_out = pl.pallas_call(
        _restyle_loop_kernel,
        grid=(b_pad // tm, n_iter),
        in_specs=[
            pl.BlockSpec((tm, CIN), lambda m, it: (m, 0)),   # resized input (bf16)
            pl.BlockSpec((1, CIN),  lambda m, it: (0, 0)),   # image_avg
            pl.BlockSpec((tm, NL),  lambda m, it: (m, 0)),   # initial latent
            pl.BlockSpec((CIN, NL), lambda m, it: (0, 0)),   # enc W, input half (resident)
            pl.BlockSpec((CIN, NL), lambda m, it: (0, 0)),   # enc W, output half (resident)
            pl.BlockSpec((1, NL),   lambda m, it: (0, 0)),   # enc bias
            pl.BlockSpec((NL, CIN), lambda m, it: (0, 0)),   # dec W (resident)
            pl.BlockSpec((1, CIN),  lambda m, it: (0, 0)),   # dec bias
        ],
        out_specs=[
            pl.BlockSpec((tm, NL),  lambda m, it: (m, 0)),   # latent (resident over it)
            pl.BlockSpec((tm, CIN), lambda m, it: (m, 0)),   # output image (resident over it)
        ],
        out_shape=(jax.ShapeDtypeStruct((b_pad, NL), jnp.float32),
                   jax.ShapeDtypeStruct((b_pad, CIN), jnp.float32)),
        scratch_shapes=[pltpu.VMEM((tm, NL), jnp.float32)],  # hoisted x_in @ W_in + b_enc
        compiler_params=pltpu.CompilerParams(
            # M tiles are independent -> "parallel" (feeds v7x's 2nd TensorCore);
            # the iteration axis carries the latent/image recurrence -> "arbitrary".
            dimension_semantics=("parallel", "arbitrary")),
    )(x_in, img0, lat0, w_in, w_out, b_enc, w_dec, b_dec)
    return (lat_out[:B].reshape(B, NS, LAT),
            img_out[:B].reshape(B, IN_NC, IMG, IMG))


class RestyleEncoderPallas:
    """Pallas re-implementation of RestyleEncoder.forward semantics."""

    def __init__(self, params, z_samples):
        self.n_styles = NS
        # bf16 matmul operands for the MXU; biases, accumulation, and the
        # recurrent latent/image stay f32.
        self.w_enc_in = params["enc_w"][:CIN].astype(COMPUTE_DT)   # cat(input, .) rows
        self.w_enc_out = params["enc_w"][CIN:].astype(COMPUTE_DT)  # cat(., output) rows
        self.b_enc = params["enc_b"].reshape(1, NL).astype(jnp.float32)
        self.w_dec = params["dec_w"].astype(COMPUTE_DT)
        self.b_dec = params["dec_b"].reshape(1, CIN).astype(jnp.float32)
        self.w_style = params["style_w"].astype(jnp.float32)
        self.b_style = params["style_b"].astype(jnp.float32)

        # --- init_avg_image() (jitted, one-time) ---
        self.latent_avg, self.image_avg = jax.jit(self._init_avg)(z_samples)
        self._fwd = jax.jit(self._forward, static_argnums=(1, 2))

    def _init_avg(self, z_samples):
        # latent_avg = decoder.style(randn(N, 512)).mean(0, keepdim=True)
        # TODO(synk): the real decoder.style is a nonlinear mapping MLP; a
        # single dense layer stands in for it here.
        latent_avg = latent_avg_from_samples(z_samples, self.w_style, self.b_style)
        # image_avg = face_pool(decoder(latent_avg repeated over n_styles))
        codes = jnp.tile(latent_avg, (1, NS)).astype(COMPUTE_DT)    # (1, NL)
        img_flat = matmul_bias(codes, self.w_dec, self.b_dec)       # (1, CIN)
        image_avg = adaptive_avg_pool(img_flat.reshape(1, IN_NC, IMG, IMG), IMG, IMG)
        return latent_avg, image_avg

    def _forward(self, input_img, n_iter, resize_output):
        B = input_img.shape[0]
        x = adaptive_avg_pool(input_img, IMG, IMG)                  # resize_input()
        x_in = x.reshape(B, CIN).astype(COMPUTE_DT)                 # bf16 once, outside the loop
        img0 = self.image_avg.reshape(1, CIN)                       # broadcast over batch in-kernel
        # latent = latent_avg.view(1, 1, 512).repeat(batch, n_styles, 1)
        lat0 = jnp.tile(self.latent_avg, (B, NS))                   # (B, NL) f32
        latent, output_img = restyle_loop(
            x_in, img0, lat0,
            self.w_enc_in, self.w_enc_out, self.b_enc,
            self.w_dec, self.b_dec, n_iter)
        if resize_output:
            output_img = adaptive_avg_pool(output_img, IMG, IMG)    # face_pool (identity here)
        return output_img, latent

    def forward(self, input_img, n_iter=1, resize_output=True):
        assert n_iter >= 1
        return self._fwd(input_img, int(n_iter), bool(resize_output))


# --------------------------- reference & demo --------------------------------

def _reference_forward(params, z_samples, input_img, n_iter):
    """Pure-jnp f32 reference of the same stand-in computation."""
    latent_avg = (jnp.mean(z_samples @ params["style_w"], axis=0, keepdims=True)
                  + params["style_b"])
    codes = jnp.tile(latent_avg, (1, NS))
    image_avg = codes @ params["dec_w"] + params["dec_b"]

    def pool(img, oh, ow):
        b, c, h, w = img.shape
        if h == oh and w == ow:
            return img
        return img.reshape(b, c, oh, h // oh, ow, w // ow).mean(axis=(3, 5))

    B = input_img.shape[0]
    x = pool(input_img, IMG, IMG).reshape(B, CIN)
    lat = jnp.tile(latent_avg, (B, NS))
    img = jnp.tile(image_avg, (B, 1))
    for _ in range(n_iter):
        resid = (x @ params["enc_w"][:CIN] + img @ params["enc_w"][CIN:]
                 + params["enc_b"])
        lat = lat + resid
        img = lat @ params["dec_w"] + params["dec_b"]
    return img.reshape(B, IN_NC, IMG, IMG), lat.reshape(B, NS, LAT)


if __name__ == "__main__":
    key = jax.random.PRNGKey(0)
    (k_in, k_sw, k_sb, k_ew, k_eb, k_dw, k_db, k_z) = jax.random.split(key, 8)

    params = {
        # decoder.style mapping stand-in (used only for latent_avg)
        "style_w": 0.1 * jax.random.normal(k_sw, (LAT, LAT), jnp.float32),
        "style_b": 0.1 * jax.random.normal(k_sb, (LAT,), jnp.float32),
        # encoder stand-in: 6*IMG*IMG -> n_styles*LAT residual
        "enc_w": 0.02 * jax.random.normal(k_ew, (2 * CIN, NL), jnp.float32),
        "enc_b": 0.01 * jax.random.normal(k_eb, (NL,), jnp.float32),
        # decoder synthesis stand-in: n_styles*LAT -> 3*IMG*IMG image
        "dec_w": 0.02 * jax.random.normal(k_dw, (NL, CIN), jnp.float32),
        "dec_b": 0.01 * jax.random.normal(k_db, (CIN,), jnp.float32),
    }
    z_samples = jax.random.normal(k_z, (N_Z, LAT), jnp.float32)

    model = RestyleEncoderPallas(params, z_samples)

    input_img = jax.random.normal(k_in, (2, IN_NC, SRC, SRC), jnp.float32)
    out_img, latent = model.forward(input_img, n_iter=2)
    jax.block_until_ready((out_img, latent))

    assert out_img.shape == (2, IN_NC, IMG, IMG), out_img.shape
    assert latent.shape == (2, NS, LAT), latent.shape
    assert bool(jnp.all(jnp.isfinite(out_img))) and bool(jnp.all(jnp.isfinite(latent)))

    # Tolerance check vs. a pure-jnp f32 reference (kernels use bf16 MXU
    # operands with f32 accumulation).
    ref_img, ref_lat = _reference_forward(params, z_samples, input_img, n_iter=2)
    img_err = float(jnp.max(jnp.abs(out_img - ref_img)))
    lat_err = float(jnp.max(jnp.abs(latent - ref_lat)))
    assert img_err < 5e-2 and lat_err < 5e-2, (img_err, lat_err)

    print("KERNEL_OK")
</pallas_src>

<mosaic_0001>
module attributes {stable_mosaic.version = 11 : i64} {
  func.func @_style_mean_kernel(%arg0: i32, %arg1: memref<64x32xbf16, #tpu.memory_space<vmem>>, %arg2: memref<32x32xbf16, #tpu.memory_space<vmem>>, %arg3: memref<1x32xf32, #tpu.memory_space<vmem>>, %arg4: memref<1x32xf32, #tpu.memory_space<vmem>>, %arg5: memref<64x32xf32, #tpu.memory_space<vmem>>) attributes {dimension_semantics = [#tpu.dimension_semantics<arbitrary>], iteration_bounds = array<i64: 1>, scalar_prefetch = 0 : i64, scratch_operands = 1 : i64, tpu.core_type = #tpu.core_type<tc>, window_params = [{transform_indices = @transform_0, window_bounds = array<i64: 64, 32>}, {pipeline_mode = #tpu.pipeline_mode<synchronous>, transform_indices = @transform_1, window_bounds = array<i64: 32, 32>}, {pipeline_mode = #tpu.pipeline_mode<synchronous>, transform_indices = @transform_2, window_bounds = array<i64: 1, 32>}, {pipeline_mode = #tpu.pipeline_mode<synchronous>, transform_indices = @transform_3, window_bounds = array<i64: 1, 32>}]} {
    %c0_i32 = arith.constant 0 : i32
    %0 = arith.cmpi eq, %arg0, %c0_i32 : i32
    %1 = arith.extui %0 : i1 to i32
    %c0_i32_0 = arith.constant 0 : i32
    %2 = arith.cmpi ne, %1, %c0_i32_0 : i32
    scf.if %2 {
      %cst_10 = arith.constant 0.000000e+00 : f32
      %12 = vector.broadcast %cst_10 : f32 to vector<64x32xf32>
      %c0_11 = arith.constant 0 : index
      %c0_12 = arith.constant 0 : index
      %13 = vector.load %arg5[%c0_11, %c0_12] : memref<64x32xf32, #tpu.memory_space<vmem>>, vector<64x32xf32>
      tpu.vector_store %arg5[%c0_11, %c0_12], %12 {strides = array<i32>} : memref<64x32xf32, #tpu.memory_space<vmem>>, vector<64x32xf32>,
    } else {
    }
    %c0 = arith.constant 0 : index
    %c0_1 = arith.constant 0 : index
    %3 = vector.load %arg5[%c0, %c0_1] : memref<64x32xf32, #tpu.memory_space<vmem>>, vector<64x32xf32>
    %c0_2 = arith.constant 0 : index
    %c0_3 = arith.constant 0 : index
    %4 = vector.load %arg1[%c0_2, %c0_3] : memref<64x32xbf16, #tpu.memory_space<vmem>>, vector<64x32xbf16>
    %c0_4 = arith.constant 0 : index
    %c0_5 = arith.constant 0 : index
    %5 = vector.load %arg2[%c0_4, %c0_5] : memref<32x32xbf16, #tpu.memory_space<vmem>>, vector<32x32xbf16>
    %cst = arith.constant dense<0.000000e+00> : vector<64x32xf32>
    %6 = tpu.matmul %4, %5, %cst {dimension_numbers = #tpu.dot_dimension_numbers<[1], [0], [0], [1], [0, 0, 1, 1], [], []>} : vector<64x32xbf16>, vector<32x32xbf16>, vector<64x32xf32> -> vector<64x32xf32>
    %7 = arith.addf %3, %6 : vector<64x32xf32>
    %c0_6 = arith.constant 0 : index
    %c0_7 = arith.constant 0 : index
    %8 = vector.load %arg5[%c0_6, %c0_7] : memref<64x32xf32, #tpu.memory_space<vmem>>, vector<64x32xf32>
    tpu.vector_store %arg5[%c0_6, %c0_7], %7 {strides = array<i32>} : memref<64x32xf32, #tpu.memory_space<vmem>>, vector<64x32xf32>,
    %c0_i32_8 = arith.constant 0 : i32
    %9 = arith.cmpi eq, %arg0, %c0_i32_8 : i32
    %10 = arith.extui %9 : i1 to i32
    %c0_i32_9 = arith.constant 0 : i32
    %11 = arith.cmpi ne, %10, %c0_i32_9 : i32
    scf.if %11 {
      %c0_10 = arith.constant 0 : index
      %c0_11 = arith.constant 0 : index
      %12 = vector.load %arg5[%c0_10, %c0_11] : memref<64x32xf32, #tpu.memory_space<vmem>>, vector<64x32xf32>
      %cst_12 = arith.constant dense<0.000000e+00> : vector<32xf32>
      %13 = vector.multi_reduction <add>, %12, %cst_12 [0] : vector<64x32xf32> to vector<32xf32>
      %14 = vector.shape_cast %13 : vector<32xf32> to vector<1x32xf32>
      %cst_13 = arith.constant 1.562500e-02 : f32
      %15 = vector.broadcast %cst_13 : f32 to vector<1x32xf32>
      %16 = arith.mulf %14, %15 : vector<1x32xf32>
      %c0_14 = arith.constant 0 : index
      %c0_15 = arith.constant 0 : index
      %17 = vector.load %arg3[%c0_14, %c0_15] : memref<1x32xf32, #tpu.memory_space<vmem>>, vector<1x32xf32>
      %18 = arith.addf %16, %17 : vector<1x32xf32>
      %c0_16 = arith.constant 0 : index
      %c0_17 = arith.constant 0 : index
      %19 = vector.load %arg4[%c0_16, %c0_17] : memref<1x32xf32, #tpu.memory_space<vmem>>, vector<1x32xf32>
      tpu.vector_store %arg4[%c0_16, %c0_17], %18 {strides = array<i32>} : memref<1x32xf32, #tpu.memory_space<vmem>>, vector<1x32xf32>,
    } else {
    }
    return
  }
  func.func @transform_0(%arg0: i32) -> (i32, i32) {
    %c0_i32 = arith.constant 0 : i32
    %c0_i32_0 = arith.constant 0 : i32
    return %arg0, %c0_i32 : i32, i32
  }
  func.func @transform_1(%arg0: i32) -> (i32, i32) {
    %c0_i32 = arith.constant 0 : i32
    %c0_i32_0 = arith.constant 0 : i32
    %c0_i32_1 = arith.constant 0 : i32
    return %c0_i32, %c0_i32_0 : i32, i32
  }
  func.func @transform_2(%arg0: i32) -> (i32, i32) {
    %c0_i32 = arith.constant 0 : i32
    %c0_i32_0 = arith.constant 0 : i32
    %c0_i32_1 = arith.constant 0 : i32
    return %c0_i32, %c0_i32_0 : i32, i32
  }
  func.func @transform_3(%arg0: i32) -> (i32, i32) {
    %c0_i32 = arith.constant 0 : i32
    %c0_i32_0 = arith.constant 0 : i32
    %c0_i32_1 = arith.constant 0 : i32
    return %c0_i32, %c0_i32_0 : i32, i32
  }
}

module attributes {stable_mosaic.version = 11 : i64} {
  func.func @_matmul_bias_kernel(%arg0: memref<1x128xbf16, #tpu.memory_space<vmem>>, %arg1: memref<128x768xbf16, #tpu.memory_space<vmem>>, %arg2: memref<1x768xf32, #tpu.memory_space<vmem>>, %arg3: memref<1x768xf32, #tpu.memory_space<vmem>>) attributes {dimension_semantics = [], scalar_prefetch = 0 : i64, scratch_operands = 0 : i64, tpu.core_type = #tpu.core_type<tc>} {
    %c0 = arith.constant 0 : index
    %c0_0 = arith.constant 0 : index
    %0 = vector.load %arg0[%c0, %c0_0] : memref<1x128xbf16, #tpu.memory_space<vmem>>, vector<1x128xbf16>
    %c0_1 = arith.constant 0 : index
    %c0_2 = arith.constant 0 : index
    %1 = vector.load %arg1[%c0_1, %c0_2] : memref<128x768xbf16, #tpu.memory_space<vmem>>, vector<128x768xbf16>
    %cst = arith.constant dense<0.000000e+00> : vector<1x768xf32>
    %2 = tpu.matmul %0, %1, %cst {dimension_numbers = #tpu.dot_dimension_numbers<[1], [0], [0], [1], [0, 0, 1, 1], [], []>} : vector<1x128xbf16>, vector<128x768xbf16>, vector<1x768xf32> -> vector<1x768xf32>
    %c0_3 = arith.constant 0 : index
    %c0_4 = arith.constant 0 : index
    %3 = vector.load %arg2[%c0_3, %c0_4] : memref<1x768xf32, #tpu.memory_space<vmem>>, vector<1x768xf32>
    %4 = arith.addf %2, %3 : vector<1x768xf32>
    %c0_5 = arith.constant 0 : index
    %c0_6 = arith.constant 0 : index
    %5 = vector.load %arg3[%c0_5, %c0_6] : memref<1x768xf32, #tpu.memory_space<vmem>>, vector<1x768xf32>
    tpu.vector_store %arg3[%c0_5, %c0_6], %4 {strides = array<i32>} : memref<1x768xf32, #tpu.memory_space<vmem>>, vector<1x768xf32>,
    return
  }
}

</mosaic_0001>

<bundles_post_ra>
// kernel: _init_avg.2
= control target key start
LH: loop header
LB: loop body
LE: loop exit
PB: predicated region body
PF: predicated region fallthrough
CT: control target
= control target key end

     0   :  { %vm19_vm0 = vcmask 261120   ;;  %v254_v1 = vmov 0.0   ;;  %vm209_vm1 = vcmask 253952   ;;  %s327_s1 = inlined_call_operand.vmem [shape: bf16[32,32], index: 1, kind: input, shape index: {}]   ;;  %s328_s0 = inlined_call_operand.vmem [shape: bf16[64,32], index: 0, kind: input, shape index: {}]   ;;  %s329_s2 = inlined_call_operand.vmem [shape: f32[1,32], index: 2, kind: input, shape index: {}]   ;;  %s330_s3 = inlined_call_operand.vmem [shape: f32[1,32], index: 3, kind: output, shape index: {}]  }
   0x1   :  { %v248_v0 = vld [vmem:[%s327_s1] sm:$0xff]   ;;  %22 = vst.msk [vmem:[#allocation2 + $0x10] sm:$0xff] %vm19_vm0, %v254_v1  ;;  %20 = vst.msk [vmem:[#allocation2] sm:$0xff] %vm19_vm0, %v254_v1  ;;  %v249_v2 = vld [vmem:[%s327_s1 + $0x8] sm:$0xff]  }
   0x2   :  { %21 = vst.msk [vmem:[#allocation2 + $0x8] sm:$0xff] %vm19_vm0, %v254_v1  ;;  %23 = vst.msk [vmem:[#allocation2 + $0x18] sm:$0xff] %vm19_vm0, %v254_v1  ;;  %231 = vmatprep.subr.bf16.mxu0 %v248_v0  ;;  %243 = vmatprep.subr.bf16.mxu1 %v248_v0  ;;  %v250_v3 = vld [vmem:[%s328_s0] sm:$0xff]   ;;  %v252_v4 = vld [vmem:[%s328_s0 + $0x10] sm:$0xff]  }
   0x3   :  { %24 = vst.msk [vmem:[#allocation2 + $0x20] sm:$0xff] %vm19_vm0, %v254_v1  ;;  %25 = vst.msk [vmem:[#allocation2 + $0x28] sm:$0xff] %vm19_vm0, %v254_v1  ;;  %232 = vmatpush3.bf16.msra.mxu0 %v248_v0  ;;  %245 = vmatpush3.bf16.msra.mxu1 %v248_v0  ;;  %v251_v5 = vld [vmem:[%s328_s0 + $0x8] sm:$0xff]   ;;  %v253_v6 = vld [vmem:[%s328_s0 + $0x18] sm:$0xff]  }
   0x4   :  { %26 = vst.msk [vmem:[#allocation2 + $0x30] sm:$0xff] %vm19_vm0, %v254_v1  ;;  %27 = vst.msk [vmem:[#allocation2 + $0x38] sm:$0xff] %vm19_vm0, %v254_v1  ;;  %233 = vmatprep.subr.bf16.mxu0 %v249_v2  ;;  %235 = vmatprep.mubr.msk.bf16.mxu0 %vm19_vm0, %v250_v3  ;;  %v207_v60 = vld [vmem:[%s329_s2] sm:$0x1] }
   0x5   :  { %244 = vmatprep.subr.bf16.mxu1 %v249_v2  ;;  %239 = vmatprep.mubr.msk.bf16.mxu1 %vm19_vm0, %v252_v4 }
   0x7   :  { %234 = vmatpush3.bf16.msra.mxu0 %v249_v2  ;;  %246 = vmatpush3.bf16.msra.mxu1 %v249_v2 }
   0x8   :  { %v30_v7 = vld [vmem:[#allocation2 + $0x10] sm:$0xff]  ;;  %v28_v9 = vld [vmem:[#allocation2] sm:$0xff] }
   0x9   :  { %v31_v12 = vld [vmem:[#allocation2 + $0x18] sm:$0xff]  ;;  %v29_v17 = vld [vmem:[#allocation2 + $0x8] sm:$0xff] }
   0xa   :  { %236 = vmatmul.mubr.msk.bf16.vlgmr.msra.gmra.mrb[0].mxu0 %vm19_vm0, %v251_v5  ;;  %240 = vmatmul.mubr.msk.bf16.vlgmr.msra.gmra.mrb[0].mxu1 %vm19_vm0, %v253_v6  ;;  %v32_v10 = vld [vmem:[#allocation2 + $0x20] sm:$0xff]  ;;  %v33_v20 = vld [vmem:[#allocation2 + $0x28] sm:$0xff] }
   0xb   :  { %v34_v8 = vld [vmem:[#allocation2 + $0x30] sm:$0xff]  ;;  %v35_v14 = vld [vmem:[#allocation2 + $0x38] sm:$0xff] }
  0xdd   :  { %v237_v11 = vpop.f32.mrb[0].mxu0  ;;  %v241_v13 = vpop.f32.mrb[0].mxu1 }
  0xde   :  { %v160_v15 = vadd.f32 %v237_v11, %v30_v7  ;;  %v127_v16 = vpop.f32.mrb[1].mxu0  ;;  %v164_v18 = vadd.f32 %v241_v13, %v34_v8  ;;  %v143_v19 = vpop.f32.mrb[1].mxu1 }
  0xdf   :  { %v158_v21 = vadd.f32 %v127_v16, %v28_v9  ;;  %v238_v22 = vpop.f32.mrb[2].mxu0  ;;  %v162_v23 = vadd.f32 %v143_v19, %v32_v10  ;;  %v242_v24 = vpop.f32.mrb[2].mxu1 }
  0xe0   :  { %168 = vst.msk [vmem:[#allocation2 + $0x10] sm:$0xff] %vm19_vm0, %v160_v15  ;;  %v161_v25 = vadd.f32 %v238_v22, %v31_v12  ;;  %v130_v26 = vpop.f32.mrb[3].mxu0  ;;  %172 = vst.msk [vmem:[#allocation2 + $0x30] sm:$0xff] %vm19_vm0, %v164_v18  ;;  %v165_v27 = vadd.f32 %v242_v24, %v35_v14  ;;  %v146_v28 = vpop.f32.mrb[3].mxu1 }
  0xe1   :  { %166 = vst.msk [vmem:[#allocation2] sm:$0xff] %vm19_vm0, %v158_v21  ;;  %v159_v29 = vadd.f32 %v130_v26, %v29_v17  ;;  %170 = vst.msk [vmem:[#allocation2 + $0x20] sm:$0xff] %vm19_vm0, %v162_v23  ;;  %v163_v30 = vadd.f32 %v146_v28, %v33_v20 }
  0xe2   :  { %169 = vst.msk [vmem:[#allocation2 + $0x18] sm:$0xff] %vm19_vm0, %v161_v25  ;;  %173 = vst.msk [vmem:[#allocation2 + $0x38] sm:$0xff] %vm19_vm0, %v165_v27 }
  0xe3   :  { %167 = vst.msk [vmem:[#allocation2 + $0x8] sm:$0xff] %vm19_vm0, %v159_v29  ;;  %171 = vst.msk [vmem:[#allocation2 + $0x28] sm:$0xff] %vm19_vm0, %v163_v30 }
  0xe7   :  { %v179_v32 = vld [vmem:[#allocation2 + $0x10] sm:$0xff] }
  0xe8   :  { %v177_v31 = vld [vmem:[#allocation2] sm:$0xff]  ;;  %v188_v39 = vsel %vm19_vm0, %v179_v32, 0.0  ;;  %v183_v45 = vld [vmem:[#allocation2 + $0x30] sm:$0xff] }
  0xe9   :  { %v185_v34 = vsel %vm19_vm0, %v177_v31, 0.0  ;;  %v180_v36 = vld [vmem:[#allocation2 + $0x18] sm:$0xff]  ;;  %v181_v38 = vld [vmem:[#allocation2 + $0x20] sm:$0xff]  ;;  %v196_v50 = vsel %vm19_vm0, %v183_v45, 0.0 }
  0xea   :  { %v178_v33 = vld [vmem:[#allocation2 + $0x8] sm:$0xff]  ;;  %v190_v41 = vsel %vm19_vm0, %v180_v36, 0.0  ;;  %v192_v42 = vsel %vm19_vm0, %v181_v38, 0.0  ;;  %v184_v48 = vld [vmem:[#allocation2 + $0x38] sm:$0xff] }
  0xeb   :  { %v186_v35 = vsel %vm19_vm0, %v178_v33, 0.0  ;;  %v182_v44 = vld [vmem:[#allocation2 + $0x28] sm:$0xff]  ;;  %v198_v52 = vsel %vm19_vm0, %v184_v48, 0.0 }
  0xec   :  { %v187_v37 = vadd.f32 %v186_v35, %v185_v34  ;;  %v194_v47 = vsel %vm19_vm0, %v182_v44, 0.0 }
  0xee   :  { %v189_v40 = vadd.f32 %v188_v39, %v187_v37 }
  0xf0   :  { %v191_v43 = vadd.f32 %v190_v41, %v189_v40 }
  0xf2   :  { %v193_v46 = vadd.f32 %v192_v42, %v191_v43 }
  0xf4   :  { %v195_v49 = vadd.f32 %v194_v47, %v193_v46 }
  0xf6   :  { %v197_v51 = vadd.f32 %v196_v50, %v195_v49 }
  0xf8   :  { %v199_v53 = vadd.f32 %v198_v52, %v197_v51 }
  0xfa   :  { %v200_v54 = vrot.slane %v199_v53, 4 }
  0xfc   :  { %v201_v55 = vadd.f32 %v200_v54, %v199_v53 }
  0xfe   :  { %v202_v56 = vrot.slane %v201_v55, 2 }
 0x100   :  { %v203_v57 = vadd.f32 %v202_v56, %v201_v55 }
 0x102   :  { %v204_v58 = vrot.slane %v203_v57, 1 }
 0x104   :  { %v205_v59 = vadd.f32 %v204_v58, %v203_v57 }
 0x106   :  { %v206_v61 = vmul.f32 0.015625, %v205_v59 }
 0x108   :  { %v208_v62 = vadd.f32 %v207_v60, %v206_v61 }
 0x10a   :  { %210 = vst.msk [vmem:[%s330_s3] sm:$0x1] %vm209_vm1, %v208_v62 }

// kernel: _init_avg.3
= control target key start
LH: loop header
LB: loop body
LE: loop exit
PB: predicated region body
PF: predicated region fallthrough
CT: control target
= control target key end

     0   :  { %v637_v1 = vmov 0   ;;  %v306_v50 = vlaneseq  ;;  %v638_v56 = vmov 1966171168   ;;  %s815_s1 = inlined_call_operand.vmem [shape: bf16[128,768], index: 1, kind: input, shape index: {}]   ;;  %s816_s0 = inlined_call_operand.vmem [shape: bf16[1,128], index: 0, kind: input, shape index: {}]   ;;  %s817_s2 = inlined_call_operand.vmem [shape: f32[1,768], index: 2, kind: input, shape index: {}]   ;;  %s818_s3 = inlined_call_operand.vmem [shape: f32[1,768], index: 3, kind: output, shape index: {}]  }
   0x1   :  { %v565_v0 = vld [vmem:[%s815_s1 + $0x4] ss:$24 sps:$4 sm:$0xff]   ;;  %368 = vmatprep.mubr.bf16.mxu0 %v637_v1  ;;  %409 = vmatprep.mubr.bf16.mxu1 %v637_v1  ;;  %v569_v3 = vld [vmem:[%s815_s1] ss:$24 sps:$4 sm:$0xff]   ;;  %v571_v5 = vld [vmem:[%s815_s1 + $0x34] ss:$24 sps:$4 sm:$0xff]   ;;  %v469_v57 = vunpack.c.l.s4 %v638_v56 }
   0x2   :  { %v567_v2 = vld [vmem:[%s815_s1 + $0xc] ss:$24 sps:$4 sm:$0xff]   ;;  %336 = vmatprep.subr.bf16.mxu0 %v565_v0  ;;  %v570_v4 = vld [vmem:[%s815_s1 + $0x8] ss:$24 sps:$4 sm:$0xff]   ;;  %v573_v6 = vld [vmem:[%s815_s1 + $0x3c] ss:$24 sps:$4 sm:$0xff]  }
   0x3   :  { %377 = vmatprep.subr.bf16.mxu1 %v567_v2  ;;  %337 = vmatpush1.bf16.msra.mxu0 %v569_v3  ;;  %v575_v7 = vld [vmem:[%s815_s1 + $0x30] ss:$24 sps:$4 sm:$0xff]   ;;  %v577_v9 = vld [vmem:[%s815_s1 + $0x64] ss:$24 sps:$4 sm:$0xff]   ;;  %v581_v11 = vld [vmem:[%s815_s1 + $0x60] ss:$24 sps:$4 sm:$0xff]   ;;  %v470_v62 = vunpack.c.0.s8 %v469_v57 }
   0x4   :  { %378 = vmatpush1.bf16.msra.mxu1 %v570_v4  ;;  %338 = vmatprep.subr.bf16.mxu0 %v571_v5  ;;  %v576_v8 = vld [vmem:[%s815_s1 + $0x38] ss:$24 sps:$4 sm:$0xff]   ;;  %v579_v10 = vld [vmem:[%s815_s1 + $0x6c] ss:$24 sps:$4 sm:$0xff]   ;;  %v582_v12 = vld [vmem:[%s815_s1 + $0x68] ss:$24 sps:$4 sm:$0xff]  }
   0x5   :  { %379 = vmatprep.subr.bf16.mxu1 %v573_v6  ;;  %v583_v13 = vld [vmem:[%s815_s1 + $0x94] ss:$24 sps:$4 sm:$0xff]   ;;  %v587_v15 = vld [vmem:[%s815_s1 + $0x90] ss:$24 sps:$4 sm:$0xff]   ;;  %v589_v17 = vld [vmem:[%s815_s1 + $0xc4] ss:$24 sps:$4 sm:$0xff]  }
   0x6   :  { %v585_v14 = vld [vmem:[%s815_s1 + $0x9c] ss:$24 sps:$4 sm:$0xff]   ;;  %v588_v16 = vld [vmem:[%s815_s1 + $0x98] ss:$24 sps:$4 sm:$0xff]   ;;  %v591_v18 = vld [vmem:[%s815_s1 + $0xcc] ss:$24 sps:$4 sm:$0xff]  }
   0x7   :  { %339 = vmatpush1.bf16.msra.mxu0 %v575_v7  ;;  %v593_v19 = vld [vmem:[%s815_s1 + $0xc0] ss:$24 sps:$4 sm:$0xff]   ;;  %v595_v21 = vld [vmem:[%s815_s1 + $0xf4] ss:$24 sps:$4 sm:$0xff]   ;;  %v599_v23 = vld [vmem:[%s815_s1 + $0xf0] ss:$24 sps:$4 sm:$0xff]  }
   0x8   :  { %380 = vmatpush1.bf16.msra.mxu1 %v576_v8  ;;  %340 = vmatprep.subr.bf16.mxu0 %v577_v9  ;;  %v594_v20 = vld [vmem:[%s815_s1 + $0xc8] ss:$24 sps:$4 sm:$0xff]   ;;  %v597_v22 = vld [vmem:[%s815_s1 + $0xfc] ss:$24 sps:$4 sm:$0xff]   ;;  %v600_v24 = vld [vmem:[%s815_s1 + $0xf8] ss:$24 sps:$4 sm:$0xff]  }
   0x9   :  { %381 = vmatprep.subr.bf16.mxu1 %v579_v10  ;;  %v601_v25 = vld [vmem:[%s815_s1 + $0x124] ss:$24 sps:$4 sm:$0xff]   ;;  %v605_v27 = vld [vmem:[%s815_s1 + $0x120] ss:$24 sps:$4 sm:$0xff]   ;;  %v607_v29 = vld [vmem:[%s815_s1 + $0x154] ss:$24 sps:$4 sm:$0xff]  }
   0xa   :  { %v603_v26 = vld [vmem:[%s815_s1 + $0x12c] ss:$24 sps:$4 sm:$0xff]   ;;  %v606_v28 = vld [vmem:[%s815_s1 + $0x128] ss:$24 sps:$4 sm:$0xff]   ;;  %v609_v30 = vld [vmem:[%s815_s1 + $0x15c] ss:$24 sps:$4 sm:$0xff]  }
   0xb   :  { %341 = vmatpush1.bf16.msra.mxu0 %v581_v11  ;;  %v611_v31 = vld [vmem:[%s815_s1 + $0x150] ss:$24 sps:$4 sm:$0xff]   ;;  %v615_v33 = vld [vmem:[%s815_s1 + $0x14] ss:$24 sps:$4 sm:$0xff]   ;;  %v15_v34 = vld [vmem:[%s816_s0] sm:$0x1] }
   0xc   :  { %382 = vmatpush1.bf16.msra.mxu1 %v582_v12  ;;  %342 = vmatprep.subr.bf16.mxu0 %v583_v13  ;;  %v612_v32 = vld [vmem:[%s815_s1 + $0x158] ss:$24 sps:$4 sm:$0xff]   ;;  %v618_v36 = vld [vmem:[%s815_s1 + $0x44] ss:$24 sps:$4 sm:$0xff]   ;;  %v621_v38 = vld [vmem:[%s815_s1 + $0x74] ss:$24 sps:$4 sm:$0xff]  }
   0xd   :  { %383 = vmatprep.subr.bf16.mxu1 %v585_v14  ;;  %v613_v35 = vld [vmem:[%s815_s1 + $0x10] ss:$24 sps:$4 sm:$0xff]   ;;  %v616_v37 = vld [vmem:[%s815_s1 + $0x40] ss:$24 sps:$4 sm:$0xff]   ;;  %v624_v40 = vld [vmem:[%s815_s1 + $0xa4] ss:$24 sps:$4 sm:$0xff]  }
   0xe   :  { %v619_v39 = vld [vmem:[%s815_s1 + $0x70] ss:$24 sps:$4 sm:$0xff]   ;;  %v622_v41 = vld [vmem:[%s815_s1 + $0xa0] ss:$24 sps:$4 sm:$0xff]   ;;  %v627_v42 = vld [vmem:[%s815_s1 + $0xd4] ss:$24 sps:$4 sm:$0xff]  }
   0xf   :  { %343 = vmatpush1.bf16.msra.mxu0 %v587_v15  ;;  %v625_v43 = vld [vmem:[%s815_s1 + $0xd0] ss:$24 sps:$4 sm:$0xff]   ;;  %v630_v44 = vld [vmem:[%s815_s1 + $0x104] ss:$24 sps:$4 sm:$0xff]   ;;  %v628_v45 = vld [vmem:[%s815_s1 + $0x100] ss:$24 sps:$4 sm:$0xff]  }
  0x10   :  { %384 = vmatpush1.bf16.msra.mxu1 %v588_v16  ;;  %344 = vmatprep.subr.bf16.mxu0 %v589_v17  ;;  %v633_v46 = vld [vmem:[%s815_s1 + $0x134] ss:$24 sps:$4 sm:$0xff]   ;;  %v631_v47 = vld [vmem:[%s815_s1 + $0x130] ss:$24 sps:$4 sm:$0xff]   ;;  %v636_v48 = vld [vmem:[%s815_s1 + $0x164] ss:$24 sps:$4 sm:$0xff]  }
  0x11   :  { %385 = vmatprep.subr.bf16.mxu1 %v591_v18  ;;  %v634_v49 = vld [vmem:[%s815_s1 + $0x160] ss:$24 sps:$4 sm:$0xff]   ;;  %v307_v51 = vshrl.u32 %v306_v50, 7  ;;  %vm508_vm0 = vcmp.lt.s32.totalorder %v306_v50, 768 }
  0x12   :  { %v64_v54 = vld [vmem:[%s817_s2] sm:$0x3f] }
  0x13   :  { %345 = vmatpush1.bf16.msra.mxu0 %v593_v19  ;;  %v308_v52 = vsub.s32 0, %v307_v51  ;;  %v316_v53 = vsub.s32 2, %v307_v51  ;;  %v312_v55 = vsub.s32 1, %v307_v51  ;;  %v320_v58 = vsub.s32 3, %v307_v51 }
  0x14   :  { %386 = vmatpush1.bf16.msra.mxu1 %v594_v20  ;;  %346 = vmatprep.subr.bf16.mxu0 %v595_v21  ;;  %v473_v7 = vsub.s32 %v470_v62, %v307_v51  ;;  %v324_v18 = vsub.s32 4, %v307_v51  ;;  %v328_v19 = vsub.s32 5, %v307_v51 }
  0x15   :  { %387 = vmatprep.subr.bf16.mxu1 %v597_v22  ;;  %v309_v59 = vrot.slane %v64_v54, %v308_v52  ;;  %v317_v60 = vrot.slane %v64_v54, %v316_v53  ;;  %v313_v61 = vrot.slane %v64_v54, %v312_v55  ;;  %v321_v63 = vrot.slane %v64_v54, %v320_v58 }
  0x16   :  { %v325_v20 = vrot.slane %v64_v54, %v324_v18  ;;  %v329_v21 = vrot.slane %v64_v54, %v328_v19 }
  0x17   :  { %347 = vmatpush1.bf16.msra.mxu0 %v599_v23 }
  0x18   :  { %388 = vmatpush1.bf16.msra.mxu1 %v600_v24  ;;  %348 = vmatprep.subr.bf16.mxu0 %v601_v25 }
  0x19   :  { %389 = vmatprep.subr.bf16.mxu1 %v603_v26 }
  0x1b   :  { %349 = vmatpush1.bf16.msra.mxu0 %v605_v27 }
  0x1c   :  { %390 = vmatpush1.bf16.msra.mxu1 %v606_v28  ;;  %350 = vmatprep.subr.bf16.mxu0 %v607_v29 }
  0x1d   :  { %391 = vmatprep.subr.bf16.mxu1 %v609_v30 }
  0x1f   :  { %351 = vmatpush1.bf16.msra.mxu0 %v611_v31 }
  0x20   :  { %392 = vmatpush1.bf16.msra.mxu1 %v612_v32  ;;  %418 = vmatprep.subr.bf16.mxu0 %v615_v33 }
  0x22   :  { %369 = vmatmul.mubr.bf16.vlgmr.msra.gmra.mrb[0].mxu0 %v15_v34 }
  0x23   :  { %410 = vmatmul.mubr.bf16.vlgmr.msra.gmra.mrb[0].mxu1 %v15_v34  ;;  %419 = vmatpush1.bf16.msra.mxu0 %v613_v35 }
  0x24   :  { %450 = vmatprep.mubr.bf16.mxu0 %v637_v1  ;;  %420 = vmatprep.subr.bf16.mxu0 %v618_v36 }
  0x27   :  { %421 = vmatpush1.bf16.msra.mxu0 %v616_v37 }
  0x28   :  { %422 = vmatprep.subr.bf16.mxu0 %v621_v38 }
  0x2b   :  { %423 = vmatpush1.bf16.msra.mxu0 %v619_v39 }
  0x2c   :  { %424 = vmatprep.subr.bf16.mxu0 %v624_v40 }
  0x2f   :  { %425 = vmatpush1.bf16.msra.mxu0 %v622_v41 }
  0x30   :  { %426 = vmatprep.subr.bf16.mxu0 %v627_v42 }
  0x33   :  { %427 = vmatpush1.bf16.msra.mxu0 %v625_v43 }
  0x34   :  { %428 = vmatprep.subr.bf16.mxu0 %v630_v44 }
  0x37   :  { %429 = vmatpush1.bf16.msra.mxu0 %v628_v45 }
  0x38   :  { %430 = vmatprep.subr.bf16.mxu0 %v633_v46 }
  0x3b   :  { %431 = vmatpush1.bf16.msra.mxu0 %v631_v47 }
  0x3c   :  { %432 = vmatprep.subr.bf16.mxu0 %v636_v48 }
  0x3f   :  { %433 = vmatpush1.bf16.msra.mxu0 %v634_v49 }
  0x42   :  { %451 = vmatmul.mubr.bf16.vlgmr.msra.gmra.mrb[4].mxu0 %v15_v34 }
  0xf5   :  { %v370_v0 = vpop.f32.mrb[0].mxu0 }
  0xf6   :  { %v411_v1 = vpop.f32.mrb[0].mxu1  ;;  %v371_v2 = vadd.f32 %v370_v0, %v309_v59  ;;  %v372_v4 = vpop.f32.mrb[1].mxu0 }
  0xf7   :  { %v412_v3 = vadd.f32 %v411_v1, %v317_v60  ;;  %v413_v5 = vpop.f32.mrb[1].mxu1  ;;  %v373_v6 = vadd.f32 %v372_v4, %v313_v61  ;;  %v374_v9 = vpop.f32.mrb[2].mxu0 }
  0xf8   :  { %v414_v8 = vadd.f32 %v413_v5, %v321_v63  ;;  %v415_v10 = vpop.f32.mrb[2].mxu1  ;;  %v375_v11 = vpop.f32.mrb[3].mxu0 }
  0xf9   :  { %v416_v12 = vpop.f32.mrb[3].mxu1  ;;  %v465_v13 = vcombine.low %v371_v2, %v373_v6 }
  0xfa   :  { %v466_v14 = vcombine.low %v412_v3, %v414_v8 }
  0xfb   :  { %v474_v15 = vrot.slane %v465_v13, %v473_v7 }
  0xfc   :  { %v481_v16 = vrot.slane %v466_v14, %v473_v7 }
  0xfe   :  { %v489_v17 = vcombine.low %v474_v15, %v481_v16 }
 0x100   :  { %v496_v30 = vrot.slane %v489_v17, %v473_v7 }
 0x115   :  { %v452_v22 = vpop.f32.mrb[4].mxu0 }
 0x116   :  { %v453_v23 = vadd.f32 %v452_v22, %v325_v20  ;;  %v454_v24 = vpop.f32.mrb[5].mxu0 }
 0x117   :  { %v455_v25 = vadd.f32 %v454_v24, %v329_v21  ;;  %v456_v26 = vpop.f32.mrb[6].mxu0 }
 0x118   :  { %v457_v27 = vpop.f32.mrb[7].mxu0 }
 0x119   :  { %v467_v28 = vcombine.low %v453_v23, %v455_v25 }
 0x11b   :  { %v488_v29 = vrot.slane %v467_v28, %v473_v7 }
 0x11d   :  { %v503_v31 = vrot.slane %v488_v29, %v473_v7 }
 0x11f   :  { %v504_v32 = vcombine.low %v496_v30, %v503_v31 }
 0x121   :  { %510 = vst.msk [vmem:[%s818_s3] sm:$0x3f] %vm508_vm0, %v504_v32 }

</bundles_post_ra>
